<compile_context>
chip_gen: v7x
topology: tpu7x:2x2x1
jax: 0.10.0
libtpu: 0.0.40
codegen_flags: <defaults>
</compile_context>

<pallas_src>
import functools

import jax
import jax.numpy as jnp
from jax import lax
from jax.experimental import pallas as pl
from jax.experimental.pallas import tpu as pltpu

_VOCAB = 52     # distinct cards
_VPAD = 128     # contraction dim padded to the MXU/lane-native width
_SUB = 64       # counts sub-tile rows: (64,128) int32 accumulator = 8 vregs


def _round_up(x, m):
    return ((x + m - 1) // m) * m


def card_embedding_kernel(idx_ref, tbl_ref, out_ref, counts_ref, *, sub):
    """One batch tile.

    idx_ref    : (TB, NC)     int32  card ids in [-1, 51]
    tbl_ref    : (128, D)     f32    combined (card+rank+suit) table, zero-pad
    out_ref    : (TB, D)      f32
    counts_ref : (TB, 128)    f32    VMEM scratch (matmul LHS)
    """
    tb, nc = idx_ref.shape
    vpad = tbl_ref.shape[0]

    # Hoisted once (JAX does not CSE broadcast_in_dim inside loops).
    iota = lax.broadcasted_iota(jnp.int32, (sub, vpad), 1)

    def build(s, carry):
        row0 = pl.multiple_of(s * sub, sub)
        idx = idx_ref[pl.ds(row0, sub), :]
        # counts[b, v] = #cards == v. -1 ("no card") never matches the iota,
        # so it contributes nothing — same semantics as clamp + valid-mask.
        counts = (idx[:, 0:1] == iota).astype(jnp.int32)
        for c in range(1, nc):                    # NC is small & static
            counts = counts + (idx[:, c:c + 1] == iota).astype(jnp.int32)
        # Single int32 -> f32 convert per sub-tile (not per card).
        counts_ref[pl.ds(row0, sub), :] = counts.astype(jnp.float32)
        return carry

    lax.fori_loop(0, tb // sub, build, 0, unroll=True)

    # Single well-shaped MXU matmul: (TB, 128) @ (128, D).
    out_ref[...] = jnp.dot(counts_ref[...], tbl_ref[...],
                           preferred_element_type=jnp.float32)


@functools.partial(jax.jit, static_argnames=("block_b",))
def card_embedding(indices, card_w, rank_w, suit_w, *, block_b=1024):
    B, NC = indices.shape
    D = card_w.shape[1]

    # Fold the three embedding tables into one combined table, zero-pad the
    # vocab axis 52 -> 128.  Feature dim is left at D (no pad, no post-slice).
    cid = jnp.arange(_VOCAB)
    comb = (card_w + rank_w[cid // 4] + suit_w[cid % 4]).astype(jnp.float32)
    tbl = jnp.zeros((_VPAD, D), jnp.float32).at[:_VOCAB, :].set(comb)

    idx = indices.astype(jnp.int32)

    # Batch tile selection:
    #   * small B: one full-array block (no sub-tiling needed),
    #   * large B: TB a multiple of _SUB, capped by block_b, with an even
    #     number of grid steps (>= 2) so the "parallel" axis balances across
    #     both TensorCores on v7x.  Partial last block is masked by Pallas.
    if B <= 2 * _SUB:
        TB, sub = B, B
    else:
        n_steps = max(2, pl.cdiv(B, block_b))
        if n_steps % 2:
            n_steps += 1
        TB = _round_up(pl.cdiv(B, n_steps), _SUB)
        sub = _SUB
    grid = (pl.cdiv(B, TB),)

    out = pl.pallas_call(
        functools.partial(card_embedding_kernel, sub=sub),
        out_shape=jax.ShapeDtypeStruct((B, D), jnp.float32),
        grid=grid,
        in_specs=[
            pl.BlockSpec((TB, NC), lambda i: (i, 0)),
            # Constant index_map: Pallas keeps this block VMEM-resident and
            # does not re-fetch it across grid steps.
            pl.BlockSpec((_VPAD, D), lambda i: (0, 0)),
        ],
        out_specs=pl.BlockSpec((TB, D), lambda i: (i, 0)),
        scratch_shapes=[pltpu.VMEM((TB, _VPAD), jnp.float32)],
        compiler_params=pltpu.CompilerParams(
            dimension_semantics=("parallel",),
        ),
    )(idx, tbl)
    return out


def card_embedding_ref(indices, card_w, rank_w, suit_w):
    """Pure-JAX reference mirroring the PyTorch forward."""
    B, NC = indices.shape
    x = indices.reshape(B * NC)
    valid = (x >= 0).astype(jnp.float32)
    x = jnp.maximum(x, 0)
    embs = card_w[x] + rank_w[x // 4] + suit_w[x % 4]
    embs = embs * valid[:, None]
    return embs.reshape(B, NC, -1).sum(axis=1)


def _run_case(key, B, NC, D, block_b):
    k_idx, k_card, k_rank, k_suit = jax.random.split(key, 4)
    card_w = jax.random.normal(k_card, (52, D), dtype=jnp.float32)
    rank_w = jax.random.normal(k_rank, (13, D), dtype=jnp.float32)
    suit_w = jax.random.normal(k_suit, (4, D), dtype=jnp.float32)
    indices = jax.random.randint(k_idx, (B, NC), -1, 52, dtype=jnp.int32)

    out = card_embedding(indices, card_w, rank_w, suit_w, block_b=block_b)
    out = jax.block_until_ready(out)
    ref = card_embedding_ref(indices, card_w, rank_w, suit_w)

    assert out.shape == (B, D), (out.shape, (B, D))
    assert jnp.allclose(out, ref, atol=1e-4, rtol=1e-4), float(
        jnp.max(jnp.abs(out - ref)))


if __name__ == "__main__":
    key = jax.random.PRNGKey(0)
    k1, k2 = jax.random.split(key)

    # Small case (module-sized example: a handful of hands, 8 cards, dim 64).
    _run_case(k1, B=4, NC=8, D=64, block_b=1024)

    # Medium case: exercises a 2-step parallel grid with a masked partial
    # last block (no batch padding) and a lane-dense D=128 output.
    _run_case(k2, B=200, NC=7, D=128, block_b=128)

    print("KERNEL_OK")
</pallas_src>

<mosaic_0001>
module attributes {stable_mosaic.version = 11 : i64} {
  func.func @card_embedding_kernel(%arg0: i32, %arg1: memref<4x8xi32, #tpu.memory_space<vmem>>, %arg2: memref<128x64xf32, #tpu.memory_space<vmem>>, %arg3: memref<4x64xf32, #tpu.memory_space<vmem>>, %arg4: memref<4x128xf32, #tpu.memory_space<vmem>>) attributes {dimension_semantics = [#tpu.dimension_semantics<parallel>], iteration_bounds = array<i64: 1>, scalar_prefetch = 0 : i64, scratch_operands = 1 : i64, tpu.core_type = #tpu.core_type<tc>, window_params = [{transform_indices = @transform_0, window_bounds = array<i64: 4, 8>}, {pipeline_mode = #tpu.pipeline_mode<synchronous>, transform_indices = @transform_1, window_bounds = array<i64: 128, 64>}, {transform_indices = @transform_2, window_bounds = array<i64: 4, 64>}]} {
    %0 = tpu.iota {dimensions = array<i32: 1>} : vector<4x128xi32>
    %c0_i32 = arith.constant 0 : i32
    %c4_i32 = arith.constant 4 : i32
    %1 = arith.muli %c0_i32, %c4_i32 : i32
    %2 = tpu.assume_multiple %1, 4 : i32
    %3 = arith.index_cast %2 : i32 to index
    %c0 = arith.constant 0 : index
    %4 = vector.load %arg1[%3, %c0] : memref<4x8xi32, #tpu.memory_space<vmem>>, vector<4x8xi32>
    %5 = vector.extract_strided_slice %4 {offsets = [0, 0], sizes = [4, 1], strides = [1, 1]} : vector<4x8xi32> to vector<4x1xi32>
    %6 = vector.broadcast %5 : vector<4x1xi32> to vector<4x128xi32>
    %7 = arith.cmpi eq, %6, %0 : vector<4x128xi32>
    %8 = arith.extui %7 : vector<4x128xi1> to vector<4x128xi32>
    %9 = vector.extract_strided_slice %4 {offsets = [0, 1], sizes = [4, 1], strides = [1, 1]} : vector<4x8xi32> to vector<4x1xi32>
    %10 = vector.broadcast %9 : vector<4x1xi32> to vector<4x128xi32>
    %11 = arith.cmpi eq, %10, %0 : vector<4x128xi32>
    %12 = arith.extui %11 : vector<4x128xi1> to vector<4x128xi32>
    %13 = arith.addi %8, %12 : vector<4x128xi32>
    %14 = vector.extract_strided_slice %4 {offsets = [0, 2], sizes = [4, 1], strides = [1, 1]} : vector<4x8xi32> to vector<4x1xi32>
    %15 = vector.broadcast %14 : vector<4x1xi32> to vector<4x128xi32>
    %16 = arith.cmpi eq, %15, %0 : vector<4x128xi32>
    %17 = arith.extui %16 : vector<4x128xi1> to vector<4x128xi32>
    %18 = arith.addi %13, %17 : vector<4x128xi32>
    %19 = vector.extract_strided_slice %4 {offsets = [0, 3], sizes = [4, 1], strides = [1, 1]} : vector<4x8xi32> to vector<4x1xi32>
    %20 = vector.broadcast %19 : vector<4x1xi32> to vector<4x128xi32>
    %21 = arith.cmpi eq, %20, %0 : vector<4x128xi32>
    %22 = arith.extui %21 : vector<4x128xi1> to vector<4x128xi32>
    %23 = arith.addi %18, %22 : vector<4x128xi32>
    %24 = vector.extract_strided_slice %4 {offsets = [0, 4], sizes = [4, 1], strides = [1, 1]} : vector<4x8xi32> to vector<4x1xi32>
    %25 = vector.broadcast %24 : vector<4x1xi32> to vector<4x128xi32>
    %26 = arith.cmpi eq, %25, %0 : vector<4x128xi32>
    %27 = arith.extui %26 : vector<4x128xi1> to vector<4x128xi32>
    %28 = arith.addi %23, %27 : vector<4x128xi32>
    %29 = vector.extract_strided_slice %4 {offsets = [0, 5], sizes = [4, 1], strides = [1, 1]} : vector<4x8xi32> to vector<4x1xi32>
    %30 = vector.broadcast %29 : vector<4x1xi32> to vector<4x128xi32>
    %31 = arith.cmpi eq, %30, %0 : vector<4x128xi32>
    %32 = arith.extui %31 : vector<4x128xi1> to vector<4x128xi32>
    %33 = arith.addi %28, %32 : vector<4x128xi32>
    %34 = vector.extract_strided_slice %4 {offsets = [0, 6], sizes = [4, 1], strides = [1, 1]} : vector<4x8xi32> to vector<4x1xi32>
    %35 = vector.broadcast %34 : vector<4x1xi32> to vector<4x128xi32>
    %36 = arith.cmpi eq, %35, %0 : vector<4x128xi32>
    %37 = arith.extui %36 : vector<4x128xi1> to vector<4x128xi32>
    %38 = arith.addi %33, %37 : vector<4x128xi32>
    %39 = vector.extract_strided_slice %4 {offsets = [0, 7], sizes = [4, 1], strides = [1, 1]} : vector<4x8xi32> to vector<4x1xi32>
    %40 = vector.broadcast %39 : vector<4x1xi32> to vector<4x128xi32>
    %41 = arith.cmpi eq, %40, %0 : vector<4x128xi32>
    %42 = arith.extui %41 : vector<4x128xi1> to vector<4x128xi32>
    %43 = arith.addi %38, %42 : vector<4x128xi32>
    %44 = arith.sitofp %43 : vector<4x128xi32> to vector<4x128xf32>
    %45 = arith.index_cast %2 : i32 to index
    %c0_0 = arith.constant 0 : index
    %46 = vector.load %arg4[%45, %c0_0] : memref<4x128xf32, #tpu.memory_space<vmem>>, vector<4x128xf32>
    tpu.vector_store %arg4[%45, %c0_0], %44 {strides = array<i32>} : memref<4x128xf32, #tpu.memory_space<vmem>>, vector<4x128xf32>,
    %c1_i32 = arith.constant 1 : i32
    %c0_1 = arith.constant 0 : index
    %c0_2 = arith.constant 0 : index
    %47 = vector.load %arg4[%c0_1, %c0_2] : memref<4x128xf32, #tpu.memory_space<vmem>>, vector<4x128xf32>
    %c0_3 = arith.constant 0 : index
    %c0_4 = arith.constant 0 : index
    %48 = vector.load %arg2[%c0_3, %c0_4] : memref<128x64xf32, #tpu.memory_space<vmem>>, vector<128x64xf32>
    %cst = arith.constant dense<0.000000e+00> : vector<4x64xf32>
    %49 = tpu.matmul %47, %48, %cst {dimension_numbers = #tpu.dot_dimension_numbers<[1], [0], [0], [1], [0, 0, 1, 1], [], []>} : vector<4x128xf32>, vector<128x64xf32>, vector<4x64xf32> -> vector<4x64xf32>
    %c0_5 = arith.constant 0 : index
    %c0_6 = arith.constant 0 : index
    %50 = vector.load %arg3[%c0_5, %c0_6] : memref<4x64xf32, #tpu.memory_space<vmem>>, vector<4x64xf32>
    tpu.vector_store %arg3[%c0_5, %c0_6], %49 {strides = array<i32>} : memref<4x64xf32, #tpu.memory_space<vmem>>, vector<4x64xf32>,
    return
  }
  func.func @transform_0(%arg0: i32) -> (i32, i32) {
    %c0_i32 = arith.constant 0 : i32
    %c0_i32_0 = arith.constant 0 : i32
    return %arg0, %c0_i32 : i32, i32
  }
  func.func @transform_1(%arg0: i32) -> (i32, i32) {
    %c0_i32 = arith.constant 0 : i32
    %c0_i32_0 = arith.constant 0 : i32
    %c0_i32_1 = arith.constant 0 : i32
    return %c0_i32, %c0_i32_0 : i32, i32
  }
  func.func @transform_2(%arg0: i32) -> (i32, i32) {
    %c0_i32 = arith.constant 0 : i32
    %c0_i32_0 = arith.constant 0 : i32
    return %arg0, %c0_i32 : i32, i32
  }
}

</mosaic_0001>

<bundles_post_ra>
// kernel: card_embedding.1
= control target key start
LH: loop header
LB: loop body
LE: loop exit
PB: predicated region body
PF: predicated region fallthrough
CT: control target
= control target key end

     0   :  { %v288_v1 = vmov 2   ;;  %v289_v2 = vmov 0   ;;  %s387_s0 = inlined_call_operand.vmem [shape: s32[4,8], index: 0, kind: input, shape index: {}]   ;;  %s388_s1 = inlined_call_operand.vmem [shape: f32[128,64], index: 1, kind: input, shape index: {}]   ;;  %s389_s2 = inlined_call_operand.hbm [shape: f32[4,64], index: 2, kind: output, shape index: {}]  }
   0x1   :  { %v14_v0 = vld [vmem:[%s387_s0] sm:$0xf]  ;;  %257 = vset.pattern.permute.xlu1 %v288_v1  ;;  %255 = vset.pattern.permute.xlu0 %v289_v2 }
   0x2   :  { %7 = vsyncpa [#allocation4], 0  ;;  %27 = vperm.xlu1 %257, %v14_v0   ;;  %16 = vperm.xlu0 %255, %v14_v0   ;;  %v65_v3 = vld [vmem:[%s388_s1] sm:$0xff]  ;;  %v66_v4 = vld [vmem:[%s388_s1 + $0x8] sm:$0xff]  ;;  %v290_v6 = vmov 0.0|0.0   ;;  %v291_v7 = vmov 3   ;;  %v12_v35 = vlaneseq }
   0x3   :  { %v220_v5 = vpack.c.bf16 %v66_v4, %v65_v3  ;;  %219 = vmatprep.subr.bf16.mxu0 %v290_v6  ;;  %v292_v8 = vmov 1   ;;  %v67_v9 = vld [vmem:[%s388_s1 + $0x10] sm:$0xff]  ;;  %v68_v10 = vld [vmem:[%s388_s1 + $0x18] sm:$0xff]  ;;  %v69_v12 = vld [vmem:[%s388_s1 + $0x20] sm:$0xff]  ;;  %v293_v14 = vmov 4   ;;  %v294_v15 = vmov 5  }
   0x4   :  { %v223_v11 = vpack.c.bf16 %v68_v10, %v67_v9  ;;  %v70_v13 = vld [vmem:[%s388_s1 + $0x28] sm:$0xff]  ;;  %v71_v17 = vld [vmem:[%s388_s1 + $0x30] sm:$0xff]  ;;  %v72_v18 = vld [vmem:[%s388_s1 + $0x38] sm:$0xff]  ;;  %v295_v20 = vmov 6   ;;  %v296_v21 = vmov 7   ;;  %vm297_vm0 = vmmov 0  }
   0x5   :  { %221 = vmatpush3.bf16.msra.mxu0 %v220_v5  ;;  %v226_v16 = vpack.c.bf16 %v70_v13, %v69_v12  ;;  %v229_v19 = vpack.c.bf16 %v72_v18, %v71_v17  ;;  %v73_v22 = vld [vmem:[%s388_s1 + $0x40] sm:$0xff]  ;;  %v74_v23 = vld [vmem:[%s388_s1 + $0x48] sm:$0xff]  ;;  %v75_v25 = vld [vmem:[%s388_s1 + $0x50] sm:$0xff]  ;;  %v298_v34 = vmov 0.0   ;;  %v13_v38 = vand.u32 127, %v12_v35 }
   0x6   :  { %258 = vset.pattern.permute.xlu1 %v291_v7  ;;  %256 = vset.pattern.permute.xlu0 %v292_v8  ;;  %v232_v24 = vpack.c.bf16 %v74_v23, %v73_v22  ;;  %v76_v26 = vld [vmem:[%s388_s1 + $0x58] sm:$0xff]  ;;  %v77_v28 = vld [vmem:[%s388_s1 + $0x60] sm:$0xff]  ;;  %v78_v29 = vld [vmem:[%s388_s1 + $0x68] sm:$0xff]  ;;  %vm151_vm9 = vcmask 519168  }
   0x7   :  { %33 = vperm.xlu1 %258, %v14_v0   ;;  %21 = vperm.xlu0 %256, %v14_v0   ;;  %v235_v27 = vpack.c.bf16 %v76_v26, %v75_v25  ;;  %v238_v30 = vpack.c.bf16 %v78_v29, %v77_v28  ;;  %v79_v31 = vld [vmem:[%s388_s1 + $0x70] sm:$0xff]  ;;  %v80_v32 = vld [vmem:[%s388_s1 + $0x78] sm:$0xff]  ;;  %s299_s1 = smov [#allocation3]  }
   0x8   :  { %222 = vmatprep.subr.bf16.mxu0 %v290_v6  ;;  %v241_v33 = vpack.c.bf16 %v80_v32, %v79_v31  ;;  %216 = vmatprep.mubr.msk.f32.mxu0 %vm297_vm0, %v298_v34  ;;  %s159_s14 = sshll.u32 %s299_s1, 4  ;;  %s160_s14 = int_to_ptr.vmem [resolvable:$true] %s159_s14 }
   0x9   :  { %224 = vmatpush3.bf16.msra.mxu0 %v223_v11  ;;  %s264_s0 = scalar_lea.vmem %s160_s14, 64  ;;  %p269_p1 = scmp.lt.s32.totalorder %s160_s14, %s160_s14 }
   0xa   :  { %225 = vmatprep.subr.bf16.mxu0 %v290_v6  ;;  %p265_p0 = scmp.ne.s32.totalorder %s160_s14, %s264_s0  ;;  %p270_p2 = scmp.lt.s32.totalorder %s264_s0, %s264_s0 }
   0xb   :  { %259 = vset.pattern.permute.xlu1 %v293_v14  ;;  %260 = vset.pattern.permute.xlu0 %v294_v15 }
   0xc   :  { %39 = vperm.xlu1 %259, %v14_v0   ;;  %45 = vperm.xlu0 %260, %v14_v0   ;;  %p271_p3 = por %p270_p2, %p269_p1 }
   0xd   :  { %227 = vmatpush3.bf16.msra.mxu0 %v226_v16 }
   0xe   :  { %228 = vmatprep.subr.bf16.mxu0 %v290_v6  ;;  %p272_p4 = pnand %p271_p3, %p265_p0 }
  0x10   :  { %261 = vset.pattern.permute.xlu1 %v295_v20  ;;  %263 = vset.pattern.permute.xlu0 %v296_v21 }
  0x11   :  { %51 = vperm.xlu1 %261, %v14_v0   ;;  %230 = vmatpush3.bf16.msra.mxu0 %v229_v19 }
  0x12   :  { %231 = vmatprep.subr.bf16.mxu0 %v290_v6 }
  0x15   :  { %262 = vset.pattern.permute.xlu1 %v296_v21  ;;  %233 = vmatpush3.bf16.msra.mxu0 %v232_v24 }
  0x16   :  { %57 = vperm.xlu1 %262, %v14_v0   ;;  %234 = vmatprep.subr.bf16.mxu0 %v290_v6 }
  0x19   :  { %236 = vmatpush3.bf16.msra.mxu0 %v235_v27 }
  0x1a   :  { %237 = vmatprep.subr.bf16.mxu0 %v290_v6 }
  0x1d   :  { %239 = vmatpush3.bf16.msra.mxu0 %v238_v30 }
  0x1e   :  { %240 = vmatprep.subr.bf16.mxu0 %v290_v6 }
  0x21   :  { %242 = vmatpush3.bf16.msra.mxu0 %v241_v33 }
  0x81   :  { %v28_v36 = vpop.permute.xlu1 %27  ;;  %v17_v37 = vpop.permute.xlu0 %16 }
  0x82   :  { %vm18_vm1 = vcmp.eq.s32.totalorder %v17_v37, %v13_v38  ;;  %vm29_vm2 = vcmp.eq.s32.totalorder %v28_v36, %v13_v38 }
  0x83   :  { %v19_v41 = vsel %vm18_vm1, 1, %v289_v2  ;;  %v30_v44 = vsel %vm29_vm2, 1, %v289_v2 }
  0x86   :  { %v34_v39 = vpop.permute.xlu1 %33  ;;  %v22_v40 = vpop.permute.xlu0 %21 }
  0x87   :  { %vm23_vm3 = vcmp.eq.s32.totalorder %v22_v40, %v13_v38  ;;  %vm35_vm4 = vcmp.eq.s32.totalorder %v34_v39, %v13_v38 }
  0x88   :  { %v24_v42 = vsel %vm23_vm3, 1, %v289_v2  ;;  %v36_v48 = vsel %vm35_vm4, 1, %v289_v2 }
  0x89   :  { %v25_v43 = vadd.s32 %v24_v42, %v19_v41 }
  0x8b   :  { %v31_v45 = vadd.s32 %v30_v44, %v25_v43  ;;  %v40_v46 = vpop.permute.xlu1 %39  ;;  %v46_v47 = vpop.permute.xlu0 %45 }
  0x8c   :  { %vm41_vm5 = vcmp.eq.s32.totalorder %v40_v46, %v13_v38  ;;  %vm47_vm6 = vcmp.eq.s32.totalorder %v46_v47, %v13_v38 }
  0x8d   :  { %v37_v49 = vadd.s32 %v36_v48, %v31_v45  ;;  %v42_v50 = vsel %vm41_vm5, 1, %v289_v2  ;;  %v48_v52 = vsel %vm47_vm6, 1, %v289_v2 }
  0x8f   :  { %v43_v51 = vadd.s32 %v42_v50, %v37_v49 }
  0x90   :  { %v52_v53 = vpop.permute.xlu1 %51 }
  0x91   :  { %vm53_vm7 = vcmp.eq.s32.totalorder %v52_v53, %v13_v38  ;;  %v49_v54 = vadd.s32 %v48_v52, %v43_v51 }
  0x92   :  { %v54_v55 = vsel %vm53_vm7, 1, %v289_v2 }
  0x93   :  { %v55_v57 = vadd.s32 %v54_v55, %v49_v54 }
  0x95   :  { %v58_v56 = vpop.permute.xlu1 %57 }
  0x96   :  { %vm59_vm8 = vcmp.eq.s32.totalorder %v58_v56, %v13_v38 }
  0x97   :  { %v60_v58 = vsel %vm59_vm8, 1, %v289_v2 }
  0x98   :  { %v61_v59 = vadd.s32 %v60_v58, %v55_v57 }
  0x9a   :  { %v62_v60 = vcvt.s32.f32 %v61_v59 }
  0x9c   :  { %63 = vst [vmem:[#allocation2] sm:$0xf] %v62_v60 }
  0xa3   :  { %v64_v61 = vld [vmem:[#allocation2] sm:$0xf] }
  0xa4   :  { %217 = vmatmul.mubr.f32.vlgmr.msra.gmra.mrb[0].mxu0 %v64_v61 }
 0x177   :  { %v147_v62 = vpop.f32.mrb[0].mxu0 }
 0x178   :  { %152 = vst.msk [vmem:[#allocation3] sm:$0xf] %vm151_vm9, %v147_v62  ;;  %v218_v63 = vpop.f32.mrb[1].mxu0 }
 0x179   :  { %275 = shalt.err (!%p272_p4)
}
 0x17a   :  { %s276_s17 = scalar_lea.hbm %s389_s2, 64 }
 0x17b   :  { %p277_p5 = scmp.ne.s32.totalorder %s389_s2, %s276_s17  ;;  %p280_p6 = scmp.lt.u32.totalorder %s276_s17, %s389_s2 }
 0x17d   :  { %p282_p7 = pnand %p280_p6, %p277_p5 }
 0x17f   :  { %285 = shalt.err (!%p282_p7)
}
 0x180   :  { %162 = dma.vmem_to_hbm [thread:$0]  %s160_s14, 64, %s389_s2, [#allocation4]  }
 0x181   :  { %286 = dma.done.wait [#allocation4], 64  }
 0x182   :  { %287 = vsyncadd [#allocation4], 4294967232 }
 0x183   :  { %166 = vsyncpa [#allocation4], 1 }

</bundles_post_ra>
